<compile_context>
chip_gen: v7x
topology: tpu7x:2x2x1
jax: 0.10.0
libtpu: 0.0.40
codegen_flags: <defaults>
</compile_context>

<pallas_src>
import jax
import jax.numpy as jnp
from jax.experimental import pallas as pl
from jax.experimental.pallas import tpu as pltpu


def _round_up(a, b):
    return ((a + b - 1) // b) * b


def _object_model_kernel(xt_ref, w1_ref, b1_ref, w2_ref, b2_ref, ot_ref):
    # xt_ref: [input_size, TL]       (original rows mapped to lanes)
    # w1_ref: [hidden, input_size]   b1_ref: [hidden, 1]
    # w2_ref: [out_dim, hidden]      b2_ref: [out_dim, 1]
    # ot_ref: [out_dim, TL]
    xt = xt_ref[...]
    ht = jnp.dot(w1_ref[...], xt, preferred_element_type=jnp.float32) + b1_ref[...]
    ht = jnp.maximum(ht, 0.0)  # ReLU
    ot = jnp.dot(w2_ref[...], ht, preferred_element_type=jnp.float32) + b2_ref[...]
    ot_ref[...] = ot.astype(ot_ref.dtype)


def object_model_forward(x, w1, b1, w2, b2, *, lane_tile=4096, small_m_threshold=1024):
    """ObjectModel forward pass.

    Args:
      x:  [B, N, input_size]
      w1: [hidden, input_size]  (PyTorch nn.Linear native [out, in] layout)
      b1: [hidden]
      w2: [out_dim, hidden]
      b2: [out_dim]
    Returns:
      [B*N, out_dim]  (out_dim == 2: speedX, speedY)
    """
    B, N, input_size = x.shape
    hidden = w1.shape[0]
    out_dim = w2.shape[0]
    M = B * N

    x2d = x.reshape(M, input_size)

    # Small-M fast path: launch + DMA setup + lane padding dwarf the work.
    if M < small_m_threshold:
        return jnp.maximum(x2d @ w1.T + b1, 0.0) @ w2.T + b2

    # Lane-dense transposed activations (one-time wrapper transpose).
    xt = x2d.T                       # [input_size, M]
    b1c = b1.reshape(hidden, 1)
    b2c = b2.reshape(out_dim, 1)

    # Lane tile: multiple of 128.  Keep >= 2 grid steps whenever there is more
    # than one tile's worth of work so both v7x TensorCores get a share.
    lane_tile = max(128, _round_up(lane_tile, 128))
    m_pad = _round_up(M, 128)
    if m_pad <= 128:
        TL = 128
    elif m_pad <= 2 * lane_tile:
        TL = _round_up((m_pad + 1) // 2, 128)   # exactly 2 grid steps
    else:
        TL = lane_tile
    grid = (pl.cdiv(M, TL),)

    # Explicit VMEM budget (correct padded-tile math; sublane dims pad to 8).
    elt = jnp.dtype(x.dtype).itemsize
    vmem_est = (
        2 * _round_up(input_size, 8) * TL * elt      # x^T blocks, double-buffered
        + 2 * _round_up(out_dim, 8) * TL * elt       # out^T blocks, double-buffered
        + _round_up(hidden, 8) * TL * 4              # h^T intermediate (f32)
        + 4 * (_round_up(hidden, 8) + _round_up(out_dim, 8)) * 128 * elt  # weights/biases
    )
    vmem_limit = int(min(max(2 * vmem_est, 16 * 1024 * 1024), 48 * 1024 * 1024))

    # Advisory cost estimate (bytes_accessed is logical, not padded, traffic).
    flops = 2 * M * (input_size * hidden + hidden * out_dim)
    bytes_accessed = (
        M * (input_size + out_dim) * elt
        + (w1.size + b1.size + w2.size + b2.size) * jnp.dtype(w1.dtype).itemsize
    )
    cost = pl.CostEstimate(flops=flops, transcendentals=0, bytes_accessed=bytes_accessed)

    out_t = pl.pallas_call(
        _object_model_kernel,
        out_shape=jax.ShapeDtypeStruct((out_dim, M), x.dtype),
        grid_spec=pltpu.PrefetchScalarGridSpec(
            num_scalar_prefetch=0,
            grid=grid,
            in_specs=[
                pl.BlockSpec((input_size, TL), lambda i: (0, i)),     # x^T tile (lane-dense)
                pl.BlockSpec((hidden, input_size), lambda i: (0, 0)),  # W1 (resident)
                pl.BlockSpec((hidden, 1), lambda i: (0, 0)),           # b1 (resident)
                pl.BlockSpec((out_dim, hidden), lambda i: (0, 0)),     # W2 (resident)
                pl.BlockSpec((out_dim, 1), lambda i: (0, 0)),          # b2 (resident)
            ],
            out_specs=pl.BlockSpec((out_dim, TL), lambda i: (0, i)),   # out^T (lane-dense)
        ),
        compiler_params=pltpu.CompilerParams(
            dimension_semantics=("parallel",),   # shards lane tiles across v7x's 2 TCs
            vmem_limit_bytes=vmem_limit,
        ),
        cost_estimate=cost,
    )(xt, w1, b1c, w2, b2c)

    return out_t.T   # [M, out_dim]


def init_params(key, input_size, hidden_size, out_size=2, dtype=jnp.float32):
    """Deterministic synthetic params in PyTorch nn.Linear layout ([out, in])."""
    k1, k2, k3, k4 = jax.random.split(key, 4)
    s1 = 1.0 / jnp.sqrt(input_size)
    s2 = 1.0 / jnp.sqrt(hidden_size)
    w1 = jax.random.uniform(k1, (hidden_size, input_size), dtype, -s1, s1)
    b1 = jax.random.uniform(k2, (hidden_size,), dtype, -s1, s1)
    w2 = jax.random.uniform(k3, (out_size, hidden_size), dtype, -s2, s2)
    b2 = jax.random.uniform(k4, (out_size,), dtype, -s2, s2)
    return w1, b1, w2, b2


def _jax_ref(x, w1, b1, w2, b2):
    x2d = x.reshape(-1, x.shape[-1])
    return jnp.maximum(x2d @ w1.T + b1, 0.0) @ w2.T + b2


if __name__ == "__main__":
    key = jax.random.PRNGKey(0)
    kx, kx2, kx3, kp = jax.random.split(key, 4)

    batch_size, n_objects, input_size, hidden_size = 2, 8, 4, 32
    w1, b1, w2, b2 = init_params(kp, input_size, hidden_size)

    # Case 1: tiny M=16; force the Pallas path (threshold=0) to exercise a
    # single lane tile wider than the array (padded reads, masked writes).
    x = jax.random.normal(kx, (batch_size, n_objects, input_size), jnp.float32)
    out = jax.block_until_ready(
        object_model_forward(x, w1, b1, w2, b2, small_m_threshold=0))
    ref = _jax_ref(x, w1, b1, w2, b2)
    assert out.shape == (batch_size * n_objects, 2)
    assert jnp.allclose(out, ref, atol=1e-5, rtol=1e-5)

    # Case 2: M=15 (ragged lane tile), forced Pallas path.
    x2 = jax.random.normal(kx2, (3, 5, input_size), jnp.float32)
    out2 = jax.block_until_ready(
        object_model_forward(x2, w1, b1, w2, b2, small_m_threshold=0))
    ref2 = _jax_ref(x2, w1, b1, w2, b2)
    assert out2.shape == (15, 2)
    assert jnp.allclose(out2, ref2, atol=1e-5, rtol=1e-5)

    # Case 3: medium M=2400 through the default path: 2-step grid (both v7x
    # TensorCores busy), ragged last lane tile.
    x3 = jax.random.normal(kx3, (8, 300, input_size), jnp.float32)
    out3 = jax.block_until_ready(object_model_forward(x3, w1, b1, w2, b2))
    ref3 = _jax_ref(x3, w1, b1, w2, b2)
    assert out3.shape == (2400, 2)
    assert jnp.allclose(out3, ref3, atol=1e-4, rtol=1e-5)

    print("KERNEL_OK")
</pallas_src>

<mosaic_0001>
module attributes {stable_mosaic.version = 11 : i64} {
  func.func @_object_model_kernel(%arg0: i32, %arg1: memref<4x128xf32, #tpu.memory_space<vmem>>, %arg2: memref<32x4xf32, #tpu.memory_space<vmem>>, %arg3: memref<32x1xf32, #tpu.memory_space<vmem>>, %arg4: memref<2x32xf32, #tpu.memory_space<vmem>>, %arg5: memref<2x1xf32, #tpu.memory_space<vmem>>, %arg6: memref<2x128xf32, #tpu.memory_space<vmem>>) attributes {dimension_semantics = [#tpu.dimension_semantics<parallel>], iteration_bounds = array<i64: 1>, scalar_prefetch = 0 : i64, scratch_operands = 0 : i64, tpu.core_type = #tpu.core_type<tc>, window_params = [{transform_indices = @transform_0, window_bounds = array<i64: 4, 128>}, {pipeline_mode = #tpu.pipeline_mode<synchronous>, transform_indices = @transform_1, window_bounds = array<i64: 32, 4>}, {pipeline_mode = #tpu.pipeline_mode<synchronous>, transform_indices = @transform_2, window_bounds = array<i64: 32, 1>}, {pipeline_mode = #tpu.pipeline_mode<synchronous>, transform_indices = @transform_3, window_bounds = array<i64: 2, 32>}, {pipeline_mode = #tpu.pipeline_mode<synchronous>, transform_indices = @transform_4, window_bounds = array<i64: 2, 1>}, {transform_indices = @transform_5, window_bounds = array<i64: 2, 128>}]} {
    %c0 = arith.constant 0 : index
    %c0_0 = arith.constant 0 : index
    %0 = vector.load %arg1[%c0, %c0_0] : memref<4x128xf32, #tpu.memory_space<vmem>>, vector<4x128xf32>
    %c0_1 = arith.constant 0 : index
    %c0_2 = arith.constant 0 : index
    %1 = vector.load %arg2[%c0_1, %c0_2] : memref<32x4xf32, #tpu.memory_space<vmem>>, vector<32x4xf32>
    %cst = arith.constant dense<0.000000e+00> : vector<32x128xf32>
    %2 = tpu.matmul %1, %0, %cst {dimension_numbers = #tpu.dot_dimension_numbers<[1], [0], [0], [1], [0, 0, 1, 1], [], []>} : vector<32x4xf32>, vector<4x128xf32>, vector<32x128xf32> -> vector<32x128xf32>
    %c0_3 = arith.constant 0 : index
    %c0_4 = arith.constant 0 : index
    %3 = vector.load %arg3[%c0_3, %c0_4] : memref<32x1xf32, #tpu.memory_space<vmem>>, vector<32x1xf32>
    %4 = vector.broadcast %3 : vector<32x1xf32> to vector<32x128xf32>
    %5 = arith.addf %2, %4 : vector<32x128xf32>
    %cst_5 = arith.constant 0.000000e+00 : f32
    %6 = vector.broadcast %cst_5 : f32 to vector<32x128xf32>
    %7 = arith.maximumf %5, %6 : vector<32x128xf32>
    %c0_6 = arith.constant 0 : index
    %c0_7 = arith.constant 0 : index
    %8 = vector.load %arg4[%c0_6, %c0_7] : memref<2x32xf32, #tpu.memory_space<vmem>>, vector<2x32xf32>
    %cst_8 = arith.constant dense<0.000000e+00> : vector<2x128xf32>
    %9 = tpu.matmul %8, %7, %cst_8 {dimension_numbers = #tpu.dot_dimension_numbers<[1], [0], [0], [1], [0, 0, 1, 1], [], []>} : vector<2x32xf32>, vector<32x128xf32>, vector<2x128xf32> -> vector<2x128xf32>
    %c0_9 = arith.constant 0 : index
    %c0_10 = arith.constant 0 : index
    %10 = vector.load %arg5[%c0_9, %c0_10] : memref<2x1xf32, #tpu.memory_space<vmem>>, vector<2x1xf32>
    %11 = vector.broadcast %10 : vector<2x1xf32> to vector<2x128xf32>
    %12 = arith.addf %9, %11 : vector<2x128xf32>
    %c0_11 = arith.constant 0 : index
    %c0_12 = arith.constant 0 : index
    %13 = vector.load %arg6[%c0_11, %c0_12] : memref<2x128xf32, #tpu.memory_space<vmem>>, vector<2x128xf32>
    tpu.vector_store %arg6[%c0_11, %c0_12], %12 {strides = array<i32>} : memref<2x128xf32, #tpu.memory_space<vmem>>, vector<2x128xf32>,
    return
  }
  func.func @transform_0(%arg0: i32) -> (i32, i32) {
    %c0_i32 = arith.constant 0 : i32
    %c0_i32_0 = arith.constant 0 : i32
    return %c0_i32, %arg0 : i32, i32
  }
  func.func @transform_1(%arg0: i32) -> (i32, i32) {
    %c0_i32 = arith.constant 0 : i32
    %c0_i32_0 = arith.constant 0 : i32
    %c0_i32_1 = arith.constant 0 : i32
    return %c0_i32, %c0_i32_0 : i32, i32
  }
  func.func @transform_2(%arg0: i32) -> (i32, i32) {
    %c0_i32 = arith.constant 0 : i32
    %c0_i32_0 = arith.constant 0 : i32
    %c0_i32_1 = arith.constant 0 : i32
    return %c0_i32, %c0_i32_0 : i32, i32
  }
  func.func @transform_3(%arg0: i32) -> (i32, i32) {
    %c0_i32 = arith.constant 0 : i32
    %c0_i32_0 = arith.constant 0 : i32
    %c0_i32_1 = arith.constant 0 : i32
    return %c0_i32, %c0_i32_0 : i32, i32
  }
  func.func @transform_4(%arg0: i32) -> (i32, i32) {
    %c0_i32 = arith.constant 0 : i32
    %c0_i32_0 = arith.constant 0 : i32
    %c0_i32_1 = arith.constant 0 : i32
    return %c0_i32, %c0_i32_0 : i32, i32
  }
  func.func @transform_5(%arg0: i32) -> (i32, i32) {
    %c0_i32 = arith.constant 0 : i32
    %c0_i32_0 = arith.constant 0 : i32
    return %c0_i32, %arg0 : i32, i32
  }
}

</mosaic_0001>

<bundles_post_ra>
// kernel: tpu_custom_call.1
= control target key start
LH: loop header
LB: loop body
LE: loop exit
PB: predicated region body
PF: predicated region fallthrough
CT: control target
= control target key end

     0   :  { %vm63_vm0 = vcmask 1043456   ;;  %vm50_vm1 = vcmask 31744   ;;  %v324_v5 = vmov 0   ;;  %s408_s0 = inlined_call_operand.vmem [shape: f32[4,16], index: 0, kind: input, shape index: {}]   ;;  %s409_s1 = inlined_call_operand.vmem [shape: f32[32,4], index: 1, kind: input, shape index: {}]   ;;  %s410_s2 = inlined_call_operand.vmem [shape: f32[32,1], index: 2, kind: input, shape index: {}]   ;;  %s411_s3 = inlined_call_operand.vmem [shape: f32[2,32], index: 3, kind: input, shape index: {}]   ;;  %s412_s4 = inlined_call_operand.vmem [shape: f32[2,1], index: 4, kind: input, shape index: {}]   ;;  %s413_s5 = inlined_call_operand.hbm [shape: f32[2,16], index: 5, kind: output, shape index: {}]  }
   0x1   :  { %v21_v0 = vld [vmem:[%s408_s0] sm:$0xf]  ;;  %v23_v2 = vld [vmem:[%s409_s1 + $0x8] sm:$0xff]  ;;  %v24_v3 = vld [vmem:[%s409_s1 + $0x10] sm:$0xff]  ;;  %298 = vset.pattern.permute.xlu0 %v324_v5 }
   0x2   :  { %v22_v1 = vld [vmem:[%s409_s1] sm:$0xff]  ;;  %268 = vmatprep.subr.msk.mxu0 %vm63_vm0, %v21_v0  ;;  %v28_v6 = vld [vmem:[%s410_s2 + $0x10] sm:$0xff] }
   0x3   :  { %270 = vmatprep.mubr.msk.f32.mxu0 %vm50_vm1, %v22_v1  ;;  %v26_v4 = vld [vmem:[%s410_s2] sm:$0xff]  ;;  %269 = vmatpush3.msk.msra.mxu0 %vm63_vm0, %v21_v0 }
   0x4   :  { %271 = vmatmul.mubr.msk.f32.vlgmr.msra.gmra.mrb[0].mxu0 %vm50_vm1, %v23_v2  ;;  %32 = vperm.xlu0 %298, %v26_v4  }
   0x5   :  { %10 = vsyncpa [#allocation3], 0  ;;  %273 = vmatprep.mubr.msk.f32.mxu0 %vm50_vm1, %v24_v3  ;;  %v25_v7 = vld [vmem:[%s409_s1 + $0x18] sm:$0xff]  ;;  %v27_v8 = vld [vmem:[%s410_s2 + $0x8] sm:$0xff]  ;;  %299 = vset.pattern.permute.xlu1 %v324_v5  ;;  %v325_v11 = vmov 0.0|0.0   ;;  %vm326_vm2 = vmmov 0  }
   0x6   :  { %42 = vperm.xlu1 %299, %v28_v6   ;;  %v29_v9 = vld [vmem:[%s410_s2 + $0x18] sm:$0xff]  ;;  %v157_v10 = vld [vmem:[%s412_s4] sm:$0x3]  ;;  %287 = vmatprep.subr.bf16.mxu1 %v325_v11  ;;  %v327_v12 = vmov 0.0   ;;  %vm163_vm3 = vcmask 261120   ;;  %s328_s4 = smov [#allocation2]  }
   0x7   :  { %284 = vmatprep.mubr.msk.f32.mxu1 %vm326_vm2, %v327_v12  ;;  %v156_v31 = vld [vmem:[%s411_s3] sm:$0x3]  ;;  %s244_s12 = sshll.u32 %s328_s4, 4  ;;  %s245_s12 = int_to_ptr.vmem [resolvable:$true] %s244_s12 }
   0x8   :  { %274 = vmatmul.mubr.msk.f32.gmra.mrb[2].mxu0 %vm50_vm1, %v25_v7  ;;  %37 = vperm.xlu0 %298, %v27_v8   ;;  %s300_s13 = scalar_lea.vmem %s245_s12, 32  ;;  %p305_p1 = scmp.lt.s32.totalorder %s245_s12, %s245_s12 }
   0x9   :  { %p301_p0 = scmp.ne.s32.totalorder %s245_s12, %s300_s13  ;;  %p306_p2 = scmp.lt.s32.totalorder %s300_s13, %s300_s13 }
   0xa   :  { %47 = vperm.xlu1 %299, %v29_v9  }
   0xb   :  { %p307_p3 = por %p306_p2, %p305_p1 }
   0xc   :  { %160 = vperm.xlu0 %298, %v157_v10  }
   0xd   :  { %p308_p4 = pnand %p307_p3, %p301_p0 }
  0x83   :  { %v33_v13 = vpop.permute.xlu0 %32 }
  0x85   :  { %v43_v14 = vpop.permute.xlu1 %42 }
  0x87   :  { %v38_v15 = vpop.permute.xlu0 %37 }
  0x89   :  { %v48_v21 = vpop.permute.xlu1 %47 }
  0x8b   :  { %v161_v32 = vpop.permute.xlu0 %160 }
  0xd7   :  { %v272_v16 = vpop.f32.mrb[0].mxu0 }
  0xd8   :  { %v139_v17 = vadd.f32 %v272_v16, %v38_v15  ;;  %v133_v18 = vpop.f32.mrb[1].mxu0 }
  0xd9   :  { %v134_v19 = vadd.f32 %v133_v18, %v33_v13 }
  0xda   :  { %v153_v20 = vmax.f32 %v139_v17, 0.0 }
  0xdb   :  { %v152_v22 = vmax.f32 %v134_v19, 0.0  ;;  %v275_v23 = vpop.f32.mrb[2].mxu0 }
  0xdc   :  { %v149_v24 = vadd.f32 %v275_v23, %v48_v21  ;;  %v143_v25 = vpop.f32.mrb[3].mxu0 }
  0xdd   :  { %v144_v26 = vadd.f32 %v143_v25, %v43_v14  ;;  %v288_v27 = vpack.c.bf16 %v153_v20, %v152_v22 }
  0xde   :  { %v155_v28 = vmax.f32 %v149_v24, 0.0 }
  0xdf   :  { %v154_v29 = vmax.f32 %v144_v26, 0.0  ;;  %289 = vmatpush3.bf16.msra.mxu1 %v288_v27 }
  0xe0   :  { %290 = vmatprep.subr.bf16.mxu1 %v325_v11 }
  0xe1   :  { %v291_v30 = vpack.c.bf16 %v155_v28, %v154_v29 }
  0xe3   :  { %292 = vmatpush3.bf16.msra.mxu1 %v291_v30 }
  0xe6   :  { %285 = vmatmul.mubr.msk.f32.vlgmr.msra.gmra.mrb[0].mxu1 %vm163_vm3, %v156_v31 }
 0x1b9   :  { %v233_v33 = vpop.f32.mrb[0].mxu1 }
 0x1ba   :  { %v234_v34 = vadd.f32 %v233_v33, %v161_v32  ;;  %v286_v35 = vpop.f32.mrb[1].mxu1 }
 0x1bc   :  { %237 = vst [vmem:[#allocation2] sm:$0x3] %v234_v34 }
 0x1bd   :  { %311 = shalt.err (!%p308_p4)
}
 0x1be   :  { %s312_s3 = scalar_lea.hbm %s413_s5, 32 }
 0x1bf   :  { %p313_p5 = scmp.ne.s32.totalorder %s413_s5, %s312_s3  ;;  %p316_p6 = scmp.lt.u32.totalorder %s312_s3, %s413_s5 }
 0x1c1   :  { %p318_p7 = pnand %p316_p6, %p313_p5 }
 0x1c3   :  { %321 = shalt.err (!%p318_p7)
}
 0x1c4   :  { %247 = dma.vmem_to_hbm [thread:$0]  %s245_s12, 32, %s413_s5, [#allocation3]  }
 0x1c5   :  { %322 = dma.done.wait [#allocation3], 32  }
 0x1c6   :  { %323 = vsyncadd [#allocation3], 4294967264 }
 0x1c7   :  { %251 = vsyncpa [#allocation3], 1 }

</bundles_post_ra>
